<compile_context>
chip_gen: v6e
topology: v6e:2x2x1
jax: 0.10.0
libtpu: 0.0.40
codegen_flags: <defaults>
</compile_context>

<pallas_src>
import math

import jax
import jax.numpy as jnp
from jax.experimental import pallas as pl
from jax.experimental.pallas import tpu as pltpu


def _mlp_kernel(x_ref, w1_ref, b1_ref, w2_ref, b2_ref, w3_ref, b3_ref, o_ref):
    # One batch tile per grid step; the whole 3-layer MLP is fused so the only
    # HBM traffic per step is the (TB, D) input tile and (TB, 128) output tile.
    x = x_ref[...]

    h1 = jnp.dot(x, w1_ref[...], preferred_element_type=jnp.float32) + b1_ref[...]
    h1 = jnp.maximum(h1, 0.0)

    h2 = jnp.dot(h1, w2_ref[...], preferred_element_type=jnp.float32) + b2_ref[...]
    h2 = jnp.maximum(h2, 0.0)

    out = jnp.dot(h2, w3_ref[...], preferred_element_type=jnp.float32) + b3_ref[...]
    o_ref[...] = out.astype(o_ref.dtype)


def _round_up(x, m):
    return ((x + m - 1) // m) * m


def network_forward(state, params, *, block_batch=1024):
    """Forward pass of Network as a single Pallas TPU kernel.

    state: (batch, input_dims) float32
    params: dict with w1,b1,w2,b2,w3,b3 (weights (in,out), biases (1,out))
    """
    w1, b1 = params["w1"], params["b1"]
    w2, b2 = params["w2"], params["b2"]
    w3, b3 = params["w3"], params["b3"]

    batch, input_dims = state.shape
    n_actions = w3.shape[1]

    # --- lane-dense output: pad fc3 out-dim up to a multiple of 128 ---------
    n_pad = _round_up(max(n_actions, 1), 128)
    if n_pad != n_actions:
        w3p = jnp.zeros((w3.shape[0], n_pad), w3.dtype).at[:, :n_actions].set(w3)
        b3p = jnp.zeros((1, n_pad), b3.dtype).at[:, :n_actions].set(b3)
    else:
        w3p, b3p = w3, b3

    # --- batch tiling: TB is a multiple of 8, batch padded to a multiple ----
    # of TB. Per-step VMEM (double-buffered state tile + output tile) for
    # TB=1024 is ~1 MiB -> comfortably inside v5e's 16 MiB / v7x's 32 MiB
    # default scoped VMEM.
    tb = min(block_batch, _round_up(max(batch, 1), 8))
    tb = _round_up(tb, 8)
    batch_pad = _round_up(batch, tb)
    if batch_pad != batch:
        state_p = jnp.zeros((batch_pad, input_dims), state.dtype).at[:batch].set(state)
    else:
        state_p = state

    grid = (batch_pad // tb,)

    def const_spec(a):
        # Weights/biases: full-extent block, same block every grid step
        # -> loaded once, VMEM-resident for the whole grid.
        return pl.BlockSpec(a.shape, lambda i: (0,) * a.ndim)

    flops = 2 * batch_pad * (input_dims * 8 + 8 * 16 + 16 * n_pad)
    bytes_accessed = (
        batch_pad * (input_dims + n_pad) * 4
        + 4 * (w1.size + b1.size + w2.size + b2.size + w3p.size + b3p.size)
    )
    cost = pl.CostEstimate(flops=flops, transcendentals=0,
                           bytes_accessed=bytes_accessed)

    out = pl.pallas_call(
        _mlp_kernel,
        out_shape=jax.ShapeDtypeStruct((batch_pad, n_pad), jnp.float32),
        grid=grid,
        in_specs=[
            pl.BlockSpec((tb, input_dims), lambda i: (i, 0)),  # state tile
            const_spec(w1), const_spec(b1),
            const_spec(w2), const_spec(b2),
            const_spec(w3p), const_spec(b3p),
        ],
        out_specs=pl.BlockSpec((tb, n_pad), lambda i: (i, 0)),
        compiler_params=pltpu.CompilerParams(
            dimension_semantics=("parallel",)),
        cost_estimate=cost,
    )(state_p, w1, b1, w2, b2, w3p, b3p)

    # Drop batch padding and the lane padding of fc3.
    return out[:batch, :n_actions]


def init_params(key, input_dims, n_actions):
    """Deterministic init mimicking PyTorch nn.Linear default
    (uniform in [-1/sqrt(fan_in), 1/sqrt(fan_in)])."""
    def linear(k, fan_in, fan_out):
        kw, kb = jax.random.split(k)
        bound = 1.0 / math.sqrt(fan_in)
        w = jax.random.uniform(kw, (fan_in, fan_out), jnp.float32, -bound, bound)
        b = jax.random.uniform(kb, (1, fan_out), jnp.float32, -bound, bound)
        return w, b

    k1, k2, k3 = jax.random.split(key, 3)
    w1, b1 = linear(k1, input_dims, 8)
    w2, b2 = linear(k2, 8, 16)
    w3, b3 = linear(k3, 16, n_actions)
    return {"w1": w1, "b1": b1, "w2": w2, "b2": b2, "w3": w3, "b3": b3}


if __name__ == "__main__":
    key = jax.random.PRNGKey(0)
    k_params, k_state = jax.random.split(key)

    batch = 2
    input_dims = 4
    n_actions = 2

    params = init_params(k_params, input_dims, n_actions)
    state = jax.random.normal(k_state, (batch, input_dims), jnp.float32)

    out = network_forward(state, params)
    out = jax.block_until_ready(out)

    # Reference check in plain JAX (same math).
    def ref(x, p):
        h = jnp.maximum(x @ p["w1"] + p["b1"], 0.0)
        h = jnp.maximum(h @ p["w2"] + p["b2"], 0.0)
        return h @ p["w3"] + p["b3"]

    expected = ref(state, params)
    assert out.shape == (batch, n_actions)
    assert jnp.allclose(out, expected, atol=1e-5, rtol=1e-5)

    # Also exercise the tiled/pipelined path (multiple grid steps + ragged batch).
    big_batch = 2048 + 37
    big_state = jax.random.normal(jax.random.PRNGKey(1),
                                  (big_batch, input_dims), jnp.float32)
    big_out = jax.block_until_ready(
        network_forward(big_state, params, block_batch=1024))
    assert big_out.shape == (big_batch, n_actions)
    assert jnp.allclose(big_out, ref(big_state, params), atol=1e-4, rtol=1e-4)

    print("KERNEL_OK")
</pallas_src>

<mosaic_0001>
module attributes {stable_mosaic.version = 11 : i64} {
  func.func @_mlp_kernel(%arg0: i32, %arg1: memref<8x4xf32, #tpu.memory_space<vmem>>, %arg2: memref<4x8xf32, #tpu.memory_space<vmem>>, %arg3: memref<1x8xf32, #tpu.memory_space<vmem>>, %arg4: memref<8x16xf32, #tpu.memory_space<vmem>>, %arg5: memref<1x16xf32, #tpu.memory_space<vmem>>, %arg6: memref<16x128xf32, #tpu.memory_space<vmem>>, %arg7: memref<1x128xf32, #tpu.memory_space<vmem>>, %arg8: memref<8x128xf32, #tpu.memory_space<vmem>>) attributes {dimension_semantics = [#tpu.dimension_semantics<parallel>], iteration_bounds = array<i64: 1>, scalar_prefetch = 0 : i64, scratch_operands = 0 : i64, tpu.core_type = #tpu.core_type<tc>, window_params = [{transform_indices = @transform_0, window_bounds = array<i64: 8, 4>}, {pipeline_mode = #tpu.pipeline_mode<synchronous>, transform_indices = @transform_1, window_bounds = array<i64: 4, 8>}, {pipeline_mode = #tpu.pipeline_mode<synchronous>, transform_indices = @transform_2, window_bounds = array<i64: 1, 8>}, {pipeline_mode = #tpu.pipeline_mode<synchronous>, transform_indices = @transform_3, window_bounds = array<i64: 8, 16>}, {pipeline_mode = #tpu.pipeline_mode<synchronous>, transform_indices = @transform_4, window_bounds = array<i64: 1, 16>}, {pipeline_mode = #tpu.pipeline_mode<synchronous>, transform_indices = @transform_5, window_bounds = array<i64: 16, 128>}, {pipeline_mode = #tpu.pipeline_mode<synchronous>, transform_indices = @transform_6, window_bounds = array<i64: 1, 128>}, {transform_indices = @transform_7, window_bounds = array<i64: 8, 128>}]} {
    %c0 = arith.constant 0 : index
    %c0_0 = arith.constant 0 : index
    %0 = vector.load %arg1[%c0, %c0_0] : memref<8x4xf32, #tpu.memory_space<vmem>>, vector<8x4xf32>
    %c0_1 = arith.constant 0 : index
    %c0_2 = arith.constant 0 : index
    %1 = vector.load %arg2[%c0_1, %c0_2] : memref<4x8xf32, #tpu.memory_space<vmem>>, vector<4x8xf32>
    %cst = arith.constant dense<0.000000e+00> : vector<8x8xf32>
    %2 = tpu.matmul %0, %1, %cst {dimension_numbers = #tpu.dot_dimension_numbers<[1], [0], [0], [1], [0, 0, 1, 1], [], []>} : vector<8x4xf32>, vector<4x8xf32>, vector<8x8xf32> -> vector<8x8xf32>
    %c0_3 = arith.constant 0 : index
    %c0_4 = arith.constant 0 : index
    %3 = vector.load %arg3[%c0_3, %c0_4] : memref<1x8xf32, #tpu.memory_space<vmem>>, vector<1x8xf32>
    %4 = vector.broadcast %3 : vector<1x8xf32> to vector<8x8xf32>
    %5 = arith.addf %2, %4 : vector<8x8xf32>
    %cst_5 = arith.constant 0.000000e+00 : f32
    %6 = vector.broadcast %cst_5 : f32 to vector<8x8xf32>
    %7 = arith.maximumf %5, %6 : vector<8x8xf32>
    %c0_6 = arith.constant 0 : index
    %c0_7 = arith.constant 0 : index
    %8 = vector.load %arg4[%c0_6, %c0_7] : memref<8x16xf32, #tpu.memory_space<vmem>>, vector<8x16xf32>
    %cst_8 = arith.constant dense<0.000000e+00> : vector<8x16xf32>
    %9 = tpu.matmul %7, %8, %cst_8 {dimension_numbers = #tpu.dot_dimension_numbers<[1], [0], [0], [1], [0, 0, 1, 1], [], []>} : vector<8x8xf32>, vector<8x16xf32>, vector<8x16xf32> -> vector<8x16xf32>
    %c0_9 = arith.constant 0 : index
    %c0_10 = arith.constant 0 : index
    %10 = vector.load %arg5[%c0_9, %c0_10] : memref<1x16xf32, #tpu.memory_space<vmem>>, vector<1x16xf32>
    %11 = vector.broadcast %10 : vector<1x16xf32> to vector<8x16xf32>
    %12 = arith.addf %9, %11 : vector<8x16xf32>
    %cst_11 = arith.constant 0.000000e+00 : f32
    %13 = vector.broadcast %cst_11 : f32 to vector<8x16xf32>
    %14 = arith.maximumf %12, %13 : vector<8x16xf32>
    %c0_12 = arith.constant 0 : index
    %c0_13 = arith.constant 0 : index
    %15 = vector.load %arg6[%c0_12, %c0_13] : memref<16x128xf32, #tpu.memory_space<vmem>>, vector<16x128xf32>
    %cst_14 = arith.constant dense<0.000000e+00> : vector<8x128xf32>
    %16 = tpu.matmul %14, %15, %cst_14 {dimension_numbers = #tpu.dot_dimension_numbers<[1], [0], [0], [1], [0, 0, 1, 1], [], []>} : vector<8x16xf32>, vector<16x128xf32>, vector<8x128xf32> -> vector<8x128xf32>
    %c0_15 = arith.constant 0 : index
    %c0_16 = arith.constant 0 : index
    %17 = vector.load %arg7[%c0_15, %c0_16] : memref<1x128xf32, #tpu.memory_space<vmem>>, vector<1x128xf32>
    %18 = vector.broadcast %17 : vector<1x128xf32> to vector<8x128xf32>
    %19 = arith.addf %16, %18 : vector<8x128xf32>
    %c0_17 = arith.constant 0 : index
    %c0_18 = arith.constant 0 : index
    %20 = vector.load %arg8[%c0_17, %c0_18] : memref<8x128xf32, #tpu.memory_space<vmem>>, vector<8x128xf32>
    tpu.vector_store %arg8[%c0_17, %c0_18], %19 {strides = array<i32>} : memref<8x128xf32, #tpu.memory_space<vmem>>, vector<8x128xf32>,
    return
  }
  func.func @transform_0(%arg0: i32) -> (i32, i32) {
    %c0_i32 = arith.constant 0 : i32
    %c0_i32_0 = arith.constant 0 : i32
    return %arg0, %c0_i32 : i32, i32
  }
  func.func @transform_1(%arg0: i32) -> (i32, i32) {
    %c0_i32 = arith.constant 0 : i32
    %c0_i32_0 = arith.constant 0 : i32
    %c0_i32_1 = arith.constant 0 : i32
    return %c0_i32, %c0_i32_0 : i32, i32
  }
  func.func @transform_2(%arg0: i32) -> (i32, i32) {
    %c0_i32 = arith.constant 0 : i32
    %c0_i32_0 = arith.constant 0 : i32
    %c0_i32_1 = arith.constant 0 : i32
    return %c0_i32, %c0_i32_0 : i32, i32
  }
  func.func @transform_3(%arg0: i32) -> (i32, i32) {
    %c0_i32 = arith.constant 0 : i32
    %c0_i32_0 = arith.constant 0 : i32
    %c0_i32_1 = arith.constant 0 : i32
    return %c0_i32, %c0_i32_0 : i32, i32
  }
  func.func @transform_4(%arg0: i32) -> (i32, i32) {
    %c0_i32 = arith.constant 0 : i32
    %c0_i32_0 = arith.constant 0 : i32
    %c0_i32_1 = arith.constant 0 : i32
    return %c0_i32, %c0_i32_0 : i32, i32
  }
  func.func @transform_5(%arg0: i32) -> (i32, i32) {
    %c0_i32 = arith.constant 0 : i32
    %c0_i32_0 = arith.constant 0 : i32
    %c0_i32_1 = arith.constant 0 : i32
    return %c0_i32, %c0_i32_0 : i32, i32
  }
  func.func @transform_6(%arg0: i32) -> (i32, i32) {
    %c0_i32 = arith.constant 0 : i32
    %c0_i32_0 = arith.constant 0 : i32
    %c0_i32_1 = arith.constant 0 : i32
    return %c0_i32, %c0_i32_0 : i32, i32
  }
  func.func @transform_7(%arg0: i32) -> (i32, i32) {
    %c0_i32 = arith.constant 0 : i32
    %c0_i32_0 = arith.constant 0 : i32
    return %arg0, %c0_i32 : i32, i32
  }
}

</mosaic_0001>

<bundles_post_ra>
// kernel: tpu_custom_call.1
= control target key start
LH: loop header
LB: loop body
LE: loop exit
PB: predicated region body
PF: predicated region fallthrough
CT: control target
= control target key end

     0   :  { %12 = vsyncpa [#allocation3], 0  ;;  %s496_s0 = inlined_call_operand.vmem [shape: f32[8,4], index: 0, kind: input, shape index: {}]   ;;  %s497_s1 = inlined_call_operand.vmem [shape: f32[4,8], index: 1, kind: input, shape index: {}]   ;;  %s498_s2 = inlined_call_operand.vmem [shape: f32[1,8], index: 2, kind: input, shape index: {}]   ;;  %s499_s3 = inlined_call_operand.hbm [shape: f32[8,16], index: 3, kind: input, shape index: {}]   ;;  %s500_s4 = inlined_call_operand.hbm [shape: f32[1,16], index: 4, kind: input, shape index: {}]   ;;  %s501_s5 = inlined_call_operand.vmem [shape: f32[16,128], index: 5, kind: input, shape index: {}]   ;;  %s502_s6 = inlined_call_operand.vmem [shape: f32[1,128], index: 6, kind: input, shape index: {}]   ;;  %s503_s7 = inlined_call_operand.hbm [shape: f32[8,128], index: 7, kind: output, shape index: {}]  }
   0x1   :  { %13 = vsyncpa [#allocation6], 0 }
   0x2   :  { %14 = vsyncpa [#allocation4], 0  ;;  %s424_s24 = smov [#allocation2]   ;;  %s425_s26 = smov [#allocation5]  }
   0x3   :  { %s27_s25 = sshll.u32 %s424_s24, 4  ;;  %s37_s27 = sshll.u32 %s425_s26, 4  ;;  %s28_s25 = int_to_ptr.vmem [resolvable:$true] %s27_s25  ;;  %s38_s27 = int_to_ptr.vmem [resolvable:$true] %s37_s27 }
   0x4   :  { %s366_s28 = scalar_lea.vmem %s28_s25, 128  ;;  %p371_p1 = scmp.lt.s32.totalorder %s28_s25, %s28_s25 }
   0x5   :  { %p367_p0 = scmp.ne.s32.totalorder %s28_s25, %s366_s28  ;;  %p372_p2 = scmp.lt.s32.totalorder %s366_s28, %s366_s28 }
   0x7   :  { %p373_p3 = por %p372_p2, %p371_p1 }
   0x9   :  { %p374_p4 = pnand %p373_p3, %p367_p0 }
   0xb   :  { %377 = shalt.err (!%p374_p4)
}
   0xc   :  { %30 = dma.hbm_to_vmem [thread:$0]  %s499_s3, 128, %s28_s25, [#allocation3]  }
   0xd   :  { %s386_s8 = scalar_lea.vmem %s38_s27, 16  ;;  %s390_s9 = scalar_lea.vmem %s38_s27, 32 }
   0xe   :  { %p387_p5 = scmp.ne.s32.totalorder %s38_s27, %s386_s8  ;;  %p391_p6 = scmp.lt.s32.totalorder %s38_s27, %s38_s27 }
   0xf   :  { %p392_p7 = scmp.lt.s32.totalorder %s390_s9, %s386_s8 }
  0x11   :  { %p393_p8 = por %p392_p7, %p391_p6 }
  0x13   :  { %p394_p9 = pnand %p393_p8, %p387_p5 }
  0x15   :  { %397 = shalt.err (!%p394_p9)
}
  0x16   :  { %40 = dma.hbm_to_vmem [thread:$0]  %s500_s4, 16, %s38_s27, [#allocation6]  }
  0x17   :  { %418 = dma.done.wait [#allocation3], 128  }
  0x18   :  { %419 = vsyncadd [#allocation3], 4294967168 }
  0x19   :  { %420 = dma.done.wait [#allocation6], 16  }
  0x1a   :  { %421 = vsyncadd [#allocation6], 4294967280  ;;  %v426_v0 = vmov 0.0   ;;  %vm427_vm0 = vmmov 0   ;;  %vm64_vm1 = vcmask 1043456   ;;  %vm60_vm2 = vcmask 31744  }
  0x1b   :  { %336 = vmatprep.subr.mxu0 %v426_v0  ;;  %338 = vmatprep.mubr.msk.f32.mxu0 %vm427_vm0, %v426_v0  ;;  %v52_v1 = vld [vmem:[%s497_s1] sm:$0xf]  ;;  %vm147_vm3 = vcmask 64512   ;;  %v223_v9 = vld [vmem:[%s501_s5 + $0x8] sm:$0xff]  ;;  %vm231_vm4 = vcmask 130048   ;;  %s428_s19 = smov [#allocation7]  }
  0x1c   :  { %341 = vmatprep.subr.mxu1 %v426_v0  ;;  %343 = vmatprep.mubr.msk.f32.mxu1 %vm427_vm0, %v426_v0  ;;  %v51_v2 = vld [vmem:[%s496_s0] sm:$0xff]  ;;  %v325_v11 = vld [vmem:[#allocation5] ss:$0 sm:$0xff]  ;;  %s312_s20 = sshll.u32 %s428_s19, 4  ;;  %s313_s20 = int_to_ptr.vmem [resolvable:$true] %s312_s20 }
  0x1d   :  { %337 = vmatpush3.msk.msra.mxu0 %vm64_vm1, %v52_v1  ;;  %v139_v3 = vld [vmem:[#allocation2] sm:$0xff]  ;;  %p403_p11 = scmp.lt.s32.totalorder %s313_s20, %s313_s20 }
  0x1e   :  { %339 = vmatmul.mubr.msk.f32.vlgmr.msra.gmra.mxu0 %vm60_vm2, %v51_v2  ;;  %346 = vmatprep.subr.mxu0 %v426_v0  ;;  %v322_v4 = vld [vmem:[%s498_s2] ss:$0 sm:$0xff] }
  0x1f   :  { %350 = vmatprep.mubr.msk.f32.mxu0 %vm427_vm0, %v426_v0  ;;  %342 = vmatpush3.msra.mxu1 %v139_v3  ;;  %v222_v10 = vld [vmem:[%s501_s5] sm:$0xff]  ;;  %s398_s5 = scalar_lea.vmem %s313_s20, 128 }
  0x20   :  { %347 = vmatpush3.msra.mxu0 %v223_v9  ;;  %v327_v16 = vld [vmem:[%s502_s6] ss:$0 sm:$0xff]  ;;  %p399_p10 = scmp.ne.s32.totalorder %s313_s20, %s398_s5  ;;  %p404_p12 = scmp.lt.s32.totalorder %s398_s5, %s398_s5 }
  0x21   :  { %348 = vmatprep.subr.mxu0 %v426_v0 }
  0x22   :  { %349 = vmatpush3.msra.mxu0 %v222_v10  ;;  %p405_p13 = por %p404_p12, %p403_p11 }
  0x24   :  { %p406_p0 = pnand %p405_p13, %p399_p10 }
  0xde   :  { %v134_v5 = vpop.f32.mrf.mxu0 }
  0xdf   :  { %v135_v6 = vadd.f32 %v322_v4, %v134_v5 }
  0xe0   :  { %v340_v7 = vpop.f32.mrf.mxu0 }
  0xe1   :  { %v138_v8 = vmax.f32 %v135_v6, 0.0 }
  0xe3   :  { %344 = vmatmul.mubr.msk.f32.vlgmr.msra.gmra.mxu1 %vm147_vm3, %v138_v8 }
 0x1a3   :  { %v217_v12 = vpop.f32.mrf.mxu1 }
 0x1a4   :  { %v218_v13 = vadd.f32 %v325_v11, %v217_v12 }
 0x1a5   :  { %v345_v14 = vpop.f32.mrf.mxu1 }
 0x1a6   :  { %v221_v15 = vmax.f32 %v218_v13, 0.0 }
 0x1a8   :  { %351 = vmatmul.mubr.msk.f32.vlgmr.msra.gmra.mxu0 %vm231_vm4, %v221_v15 }
 0x268   :  { %v301_v17 = vpop.f32.mrf.mxu0 }
 0x269   :  { %v302_v18 = vadd.f32 %v327_v16, %v301_v17 }
 0x26a   :  { %v352_v19 = vpop.f32.mrf.mxu0 }
 0x26b   :  { %305 = vst [vmem:[#allocation7] sm:$0xff] %v302_v18 }
 0x26c   :  { %409 = shalt.err (!%p406_p0)
}
 0x26d   :  { %315 = dma.vmem_to_hbm [thread:$0]  %s313_s20, 128, %s503_s7, [#allocation4]  }
 0x26e   :  { %422 = dma.done.wait [#allocation4], 128  }
 0x26f   :  { %423 = vsyncadd [#allocation4], 4294967168 }
 0x270   :  { %319 = vsyncpa [#allocation3], 1 }
 0x271   :  { %320 = vsyncpa [#allocation6], 1 }
 0x272   :  { %321 = vsyncpa [#allocation4], 1 }

</bundles_post_ra>
